<compile_context>
chip_gen: v7x
topology: tpu7x:2x2x1
jax: 0.10.0
libtpu: 0.0.40
codegen_flags: <defaults>
</compile_context>

<pallas_src>
import functools

import jax
import jax.numpy as jnp
from jax.experimental import pallas as pl
from jax.experimental.pallas import tpu as pltpu

_BN_EPS = 1e-5
_LANE = 128
_VMEM_BUDGET = 40 * 1024 * 1024  # keep headroom under v7x's 64 MiB per-TC VMEM


def _round_up(x, m=_LANE):
    return ((x + m - 1) // m) * m


def _full_spec(shape):
    # Whole-array block (grid is a single point); resident in VMEM.
    return pl.BlockSpec(shape, lambda: tuple(0 for _ in shape))


# ----------------------------------------------------------------------------
# Fused decoder kernel: [Linear -> BN(train) -> ReLU] * n_hidden -> Linear -> Sigmoid
# ----------------------------------------------------------------------------
def _make_decoder_kernel(n_hidden, inv_b):
    """Build a kernel for a decoder with `n_hidden` BN+ReLU layers + 1 sigmoid layer.

    Ref layout (all padded):
      refs[0]                      : z            (B, Din_pad)        f32
      refs[1 + 3*i .. 1 + 3*i + 2] : w_i (matmul dtype), gamma_i, beta_i (f32)
      refs[1 + 3*n_hidden]         : w_last       (Dprev_pad, Dout_pad)
      refs[2 + 3*n_hidden]         : b_last       (1, Dout_pad)       f32
      refs[-1]                     : o_ref        (B, Dout_pad)       f32
    """

    def kernel(*refs):
        z_ref = refs[0]
        o_ref = refs[-1]

        x = z_ref[...]                                    # (B, Din_pad) f32
        idx = 1
        for _ in range(n_hidden):
            w_ref, g_ref, be_ref = refs[idx], refs[idx + 1], refs[idx + 2]
            idx += 3
            w = w_ref[...]
            # Linear (bias omitted: cancelled exactly by the BN mean subtraction).
            # Only the MXU operands are cast to the weight dtype (e.g. bf16);
            # accumulation and everything downstream is f32.
            y = jnp.dot(x.astype(w.dtype), w, preferred_element_type=jnp.float32)

            # Fused training-mode BatchNorm1d: one pass over y for both
            # reductions, all (1, D) math hoisted, one broadcast FMA for BN+ReLU.
            s = jnp.sum(y, axis=0, keepdims=True)         # (1, D)
            sq = jnp.sum(y * y, axis=0, keepdims=True)    # (1, D)
            mean = s * inv_b
            var = sq * inv_b - mean * mean                # biased variance (f32)
            scale = jax.lax.rsqrt(var + _BN_EPS) * g_ref[...]
            shift = be_ref[...] - mean * scale
            x = jnp.maximum(y * scale + shift, 0.0)       # BN affine + ReLU

        # Final Linear + Sigmoid (bias kept here).
        w_ref, b_ref = refs[idx], refs[idx + 1]
        w = w_ref[...]
        y = jnp.dot(x.astype(w.dtype), w, preferred_element_type=jnp.float32) + b_ref[...]
        o_ref[...] = jax.nn.sigmoid(y)

    return kernel


# ----------------------------------------------------------------------------
# One-time parameter prep: pad to lane-dense shapes, optionally pre-cast weights.
# ----------------------------------------------------------------------------
def pad_decoder_params(params, latent_size, matmul_dtype=jnp.float32):
    """Zero-pad all parameters to multiples of 128 lanes ONCE (outside the jit).

    * Hidden-layer Linear biases are dropped (cancelled by BN mean subtraction).
    * Weights are stored in `matmul_dtype` (use jnp.bfloat16 to feed the MXU at
      full rate and halve weight VMEM/DMA bytes); gamma/beta/bias stay float32
      so all VPU/EUP elementwise math remains f32 (important on v5e).
    """
    padded = []
    cur_in_pad = _round_up(latent_size)
    n_layers = len(params)
    for i, layer in enumerate(params):
        d_in, d_out = layer["w_t"].shape
        dout_pad = _round_up(d_out)
        # Padded input rows and padded output columns are 0, so padded lanes
        # carry exact zeros through the whole network.
        w_p = jnp.pad(layer["w_t"],
                      ((0, cur_in_pad - d_in), (0, dout_pad - d_out)))
        entry = {"w": w_p.astype(matmul_dtype)}
        if i + 1 < n_layers:
            entry["gamma"] = jnp.pad(layer["gamma"], ((0, 0), (0, dout_pad - d_out)))
            entry["beta"] = jnp.pad(layer["beta"], ((0, 0), (0, dout_pad - d_out)))
        else:
            entry["b"] = jnp.pad(layer["b"], ((0, 0), (0, dout_pad - d_out)))
        padded.append(entry)
        cur_in_pad = dout_pad
    return padded


# ----------------------------------------------------------------------------
# Jitted forward: pad only z, one fused pallas_call, slice output.
# ----------------------------------------------------------------------------
@functools.partial(jax.jit, static_argnames=("out_dim",))
def decoder_apply(padded_params, z, out_dim):
    B, din = z.shape
    n_layers = len(padded_params)
    n_hidden = n_layers - 1

    din_pad = padded_params[0]["w"].shape[0]
    z_p = jnp.pad(z, ((0, 0), (0, din_pad - din)))  # only the tiny input is padded per call

    kernel_inputs = [z_p]
    in_specs = [_full_spec(z_p.shape)]
    flops = 0
    transcendentals = 0
    for i, layer in enumerate(padded_params):
        w = layer["w"]
        kernel_inputs.append(w)
        in_specs.append(_full_spec(w.shape))
        flops += 2 * B * w.shape[0] * w.shape[1]
        if i < n_hidden:
            kernel_inputs += [layer["gamma"], layer["beta"]]
            in_specs += [_full_spec(layer["gamma"].shape),
                         _full_spec(layer["beta"].shape)]
            transcendentals += w.shape[1]              # rsqrt per column
        else:
            kernel_inputs.append(layer["b"])
            in_specs.append(_full_spec(layer["b"].shape))
            transcendentals += B * w.shape[1]          # sigmoid exp

    out_pad = padded_params[-1]["w"].shape[1]

    # Everything is VMEM-resident at once (grid=() -> no pipelining). Guard the
    # working set against v7x's smaller VMEM and set the scoped limit explicitly.
    in_bytes = sum(a.size * a.dtype.itemsize for a in kernel_inputs)
    out_bytes = B * out_pad * 4
    footprint = in_bytes + out_bytes
    assert footprint <= _VMEM_BUDGET, (
        f"decoder working set {footprint} B exceeds VMEM budget; "
        "switch to a batch/K-tiled grid for large hidden dims")
    vmem_limit = int(min(48 * 1024 * 1024, max(16 * 1024 * 1024, 2 * footprint)))

    cost = pl.CostEstimate(flops=int(flops),
                           transcendentals=int(transcendentals),
                           bytes_accessed=int(footprint))

    out_p = pl.pallas_call(
        _make_decoder_kernel(n_hidden, 1.0 / B),
        out_shape=jax.ShapeDtypeStruct((B, out_pad), jnp.float32),
        grid=(),
        in_specs=in_specs,
        out_specs=_full_spec((B, out_pad)),
        compiler_params=pltpu.CompilerParams(vmem_limit_bytes=vmem_limit),
        cost_estimate=cost,
    )(*kernel_inputs)

    return out_p[:, :out_dim]


# ----------------------------------------------------------------------------
# Parameter init (deterministic, synthetic) and pure-JAX reference
# ----------------------------------------------------------------------------
def init_decoder_params(key, layer_sizes, latent_size):
    params = []
    in_sizes = [latent_size] + list(layer_sizes[:-1])
    for i, (din, dout) in enumerate(zip(in_sizes, layer_sizes)):
        key, kw, kb, kg, kbe = jax.random.split(key, 5)
        # nn.Linear weight is (out, in); store pre-transposed (in, out).
        w_t = (jax.random.normal(kw, (din, dout), jnp.float32)
               / jnp.sqrt(jnp.float32(din)))
        b = 0.1 * jax.random.normal(kb, (1, dout), jnp.float32)
        layer = {"w_t": w_t, "b": b}
        if i + 1 < len(layer_sizes):
            layer["gamma"] = 1.0 + 0.1 * jax.random.normal(kg, (1, dout), jnp.float32)
            layer["beta"] = 0.1 * jax.random.normal(kbe, (1, dout), jnp.float32)
        params.append(layer)
    return params


def decoder_reference(params, z):
    """Pure-JAX reference mirroring PyTorch (training-mode BN) semantics,
    including the Linear bias in BN layers (which BN cancels)."""
    x = z
    n_layers = len(params)
    for i, layer in enumerate(params):
        y = x @ layer["w_t"] + layer["b"]
        if i + 1 < n_layers:
            mean = jnp.mean(y, axis=0, keepdims=True)
            var = jnp.mean((y - mean) ** 2, axis=0, keepdims=True)
            y = (y - mean) / jnp.sqrt(var + _BN_EPS)
            y = y * layer["gamma"] + layer["beta"]
            x = jnp.maximum(y, 0.0)
        else:
            x = jax.nn.sigmoid(y)
    return x


if __name__ == "__main__":
    key = jax.random.PRNGKey(0)
    k_params, k_z = jax.random.split(key)

    batch = 16
    latent_size = 8
    layer_sizes = [32, 64, 16]   # two hidden layers (BN+ReLU) + sigmoid output

    params = init_decoder_params(k_params, layer_sizes, latent_size)
    z = jax.random.normal(k_z, (batch, latent_size), jnp.float32)
    ref = decoder_reference(params, z)

    # f32-MXU path (tight tolerance vs the f32 reference).
    padded_f32 = pad_decoder_params(params, latent_size, jnp.float32)
    out_f32 = jax.block_until_ready(
        decoder_apply(padded_f32, z, out_dim=layer_sizes[-1]))
    assert out_f32.shape == (batch, layer_sizes[-1])
    assert jnp.allclose(out_f32, ref, atol=1e-5, rtol=1e-5), "f32 path mismatch"

    # bf16-MXU path: weights pre-cast once, activations cast at the dot only.
    # Looser tolerance vs the f32 reference (bf16 matmul rounding).
    padded_bf16 = pad_decoder_params(params, latent_size, jnp.bfloat16)
    out_bf16 = jax.block_until_ready(
        decoder_apply(padded_bf16, z, out_dim=layer_sizes[-1]))
    assert out_bf16.shape == (batch, layer_sizes[-1])
    assert jnp.allclose(out_bf16, ref, atol=5e-2, rtol=5e-2), "bf16 path mismatch"

    print("KERNEL_OK")
</pallas_src>

<mosaic_0001>
module attributes {stable_mosaic.version = 11 : i64} {
  func.func @kernel(%arg0: memref<16x128xf32, #tpu.memory_space<vmem>>, %arg1: memref<128x128xf32, #tpu.memory_space<vmem>>, %arg2: memref<1x128xf32, #tpu.memory_space<vmem>>, %arg3: memref<1x128xf32, #tpu.memory_space<vmem>>, %arg4: memref<128x128xf32, #tpu.memory_space<vmem>>, %arg5: memref<1x128xf32, #tpu.memory_space<vmem>>, %arg6: memref<1x128xf32, #tpu.memory_space<vmem>>, %arg7: memref<128x128xf32, #tpu.memory_space<vmem>>, %arg8: memref<1x128xf32, #tpu.memory_space<vmem>>, %arg9: memref<16x128xf32, #tpu.memory_space<vmem>>) attributes {dimension_semantics = [], scalar_prefetch = 0 : i64, scratch_operands = 0 : i64, tpu.core_type = #tpu.core_type<tc>} {
    %c0 = arith.constant 0 : index
    %c0_0 = arith.constant 0 : index
    %0 = vector.load %arg0[%c0, %c0_0] : memref<16x128xf32, #tpu.memory_space<vmem>>, vector<16x128xf32>
    %c0_1 = arith.constant 0 : index
    %c0_2 = arith.constant 0 : index
    %1 = vector.load %arg1[%c0_1, %c0_2] : memref<128x128xf32, #tpu.memory_space<vmem>>, vector<128x128xf32>
    %cst = arith.constant dense<0.000000e+00> : vector<16x128xf32>
    %2 = tpu.matmul %0, %1, %cst {dimension_numbers = #tpu.dot_dimension_numbers<[1], [0], [0], [1], [0, 0, 1, 1], [], []>} : vector<16x128xf32>, vector<128x128xf32>, vector<16x128xf32> -> vector<16x128xf32>
    %cst_3 = arith.constant dense<0.000000e+00> : vector<128xf32>
    %3 = vector.multi_reduction <add>, %2, %cst_3 [0] : vector<16x128xf32> to vector<128xf32>
    %4 = vector.shape_cast %3 : vector<128xf32> to vector<1x128xf32>
    %5 = arith.mulf %2, %2 : vector<16x128xf32>
    %cst_4 = arith.constant dense<0.000000e+00> : vector<128xf32>
    %6 = vector.multi_reduction <add>, %5, %cst_4 [0] : vector<16x128xf32> to vector<128xf32>
    %7 = vector.shape_cast %6 : vector<128xf32> to vector<1x128xf32>
    %cst_5 = arith.constant 6.250000e-02 : f32
    %8 = vector.broadcast %cst_5 : f32 to vector<1x128xf32>
    %9 = arith.mulf %4, %8 : vector<1x128xf32>
    %cst_6 = arith.constant 6.250000e-02 : f32
    %10 = vector.broadcast %cst_6 : f32 to vector<1x128xf32>
    %11 = arith.mulf %7, %10 : vector<1x128xf32>
    %12 = arith.mulf %9, %9 : vector<1x128xf32>
    %13 = arith.subf %11, %12 : vector<1x128xf32>
    %cst_7 = arith.constant 9.99999974E-6 : f32
    %14 = vector.broadcast %cst_7 : f32 to vector<1x128xf32>
    %15 = arith.addf %13, %14 : vector<1x128xf32>
    %16 = math.rsqrt %15 : vector<1x128xf32>
    %c0_8 = arith.constant 0 : index
    %c0_9 = arith.constant 0 : index
    %17 = vector.load %arg2[%c0_8, %c0_9] : memref<1x128xf32, #tpu.memory_space<vmem>>, vector<1x128xf32>
    %18 = arith.mulf %16, %17 : vector<1x128xf32>
    %c0_10 = arith.constant 0 : index
    %c0_11 = arith.constant 0 : index
    %19 = vector.load %arg3[%c0_10, %c0_11] : memref<1x128xf32, #tpu.memory_space<vmem>>, vector<1x128xf32>
    %20 = arith.mulf %9, %18 : vector<1x128xf32>
    %21 = arith.subf %19, %20 : vector<1x128xf32>
    %22 = vector.broadcast %18 : vector<1x128xf32> to vector<16x128xf32>
    %23 = arith.mulf %2, %22 : vector<16x128xf32>
    %24 = vector.broadcast %21 : vector<1x128xf32> to vector<16x128xf32>
    %25 = arith.addf %23, %24 : vector<16x128xf32>
    %cst_12 = arith.constant 0.000000e+00 : f32
    %26 = vector.broadcast %cst_12 : f32 to vector<16x128xf32>
    %27 = arith.maximumf %25, %26 : vector<16x128xf32>
    %c0_13 = arith.constant 0 : index
    %c0_14 = arith.constant 0 : index
    %28 = vector.load %arg4[%c0_13, %c0_14] : memref<128x128xf32, #tpu.memory_space<vmem>>, vector<128x128xf32>
    %cst_15 = arith.constant dense<0.000000e+00> : vector<16x128xf32>
    %29 = tpu.matmul %27, %28, %cst_15 {dimension_numbers = #tpu.dot_dimension_numbers<[1], [0], [0], [1], [0, 0, 1, 1], [], []>} : vector<16x128xf32>, vector<128x128xf32>, vector<16x128xf32> -> vector<16x128xf32>
    %cst_16 = arith.constant dense<0.000000e+00> : vector<128xf32>
    %30 = vector.multi_reduction <add>, %29, %cst_16 [0] : vector<16x128xf32> to vector<128xf32>
    %31 = vector.shape_cast %30 : vector<128xf32> to vector<1x128xf32>
    %32 = arith.mulf %29, %29 : vector<16x128xf32>
    %cst_17 = arith.constant dense<0.000000e+00> : vector<128xf32>
    %33 = vector.multi_reduction <add>, %32, %cst_17 [0] : vector<16x128xf32> to vector<128xf32>
    %34 = vector.shape_cast %33 : vector<128xf32> to vector<1x128xf32>
    %cst_18 = arith.constant 6.250000e-02 : f32
    %35 = vector.broadcast %cst_18 : f32 to vector<1x128xf32>
    %36 = arith.mulf %31, %35 : vector<1x128xf32>
    %cst_19 = arith.constant 6.250000e-02 : f32
    %37 = vector.broadcast %cst_19 : f32 to vector<1x128xf32>
    %38 = arith.mulf %34, %37 : vector<1x128xf32>
    %39 = arith.mulf %36, %36 : vector<1x128xf32>
    %40 = arith.subf %38, %39 : vector<1x128xf32>
    %cst_20 = arith.constant 9.99999974E-6 : f32
    %41 = vector.broadcast %cst_20 : f32 to vector<1x128xf32>
    %42 = arith.addf %40, %41 : vector<1x128xf32>
    %43 = math.rsqrt %42 : vector<1x128xf32>
    %c0_21 = arith.constant 0 : index
    %c0_22 = arith.constant 0 : index
    %44 = vector.load %arg5[%c0_21, %c0_22] : memref<1x128xf32, #tpu.memory_space<vmem>>, vector<1x128xf32>
    %45 = arith.mulf %43, %44 : vector<1x128xf32>
    %c0_23 = arith.constant 0 : index
    %c0_24 = arith.constant 0 : index
    %46 = vector.load %arg6[%c0_23, %c0_24] : memref<1x128xf32, #tpu.memory_space<vmem>>, vector<1x128xf32>
    %47 = arith.mulf %36, %45 : vector<1x128xf32>
    %48 = arith.subf %46, %47 : vector<1x128xf32>
    %49 = vector.broadcast %45 : vector<1x128xf32> to vector<16x128xf32>
    %50 = arith.mulf %29, %49 : vector<16x128xf32>
    %51 = vector.broadcast %48 : vector<1x128xf32> to vector<16x128xf32>
    %52 = arith.addf %50, %51 : vector<16x128xf32>
    %cst_25 = arith.constant 0.000000e+00 : f32
    %53 = vector.broadcast %cst_25 : f32 to vector<16x128xf32>
    %54 = arith.maximumf %52, %53 : vector<16x128xf32>
    %c0_26 = arith.constant 0 : index
    %c0_27 = arith.constant 0 : index
    %55 = vector.load %arg7[%c0_26, %c0_27] : memref<128x128xf32, #tpu.memory_space<vmem>>, vector<128x128xf32>
    %cst_28 = arith.constant dense<0.000000e+00> : vector<16x128xf32>
    %56 = tpu.matmul %54, %55, %cst_28 {dimension_numbers = #tpu.dot_dimension_numbers<[1], [0], [0], [1], [0, 0, 1, 1], [], []>} : vector<16x128xf32>, vector<128x128xf32>, vector<16x128xf32> -> vector<16x128xf32>
    %c0_29 = arith.constant 0 : index
    %c0_30 = arith.constant 0 : index
    %57 = vector.load %arg8[%c0_29, %c0_30] : memref<1x128xf32, #tpu.memory_space<vmem>>, vector<1x128xf32>
    %58 = vector.broadcast %57 : vector<1x128xf32> to vector<16x128xf32>
    %59 = arith.addf %56, %58 : vector<16x128xf32>
    %60 = arith.negf %59 : vector<16x128xf32>
    %61 = math.exp %60 : vector<16x128xf32>
    %cst_31 = arith.constant 1.000000e+00 : f32
    %62 = vector.broadcast %cst_31 : f32 to vector<16x128xf32>
    %63 = arith.addf %62, %61 : vector<16x128xf32>
    %64 = arith.divf %62, %63 : vector<16x128xf32>
    %c0_32 = arith.constant 0 : index
    %c0_33 = arith.constant 0 : index
    %65 = vector.load %arg9[%c0_32, %c0_33] : memref<16x128xf32, #tpu.memory_space<vmem>>, vector<16x128xf32>
    tpu.vector_store %arg9[%c0_32, %c0_33], %64 {strides = array<i32>} : memref<16x128xf32, #tpu.memory_space<vmem>>, vector<16x128xf32>,
    return
  }
}

</mosaic_0001>

<bundles_post_ra>
// kernel: decoder_apply.1
= control target key start
LH: loop header
LB: loop body
LE: loop exit
PB: predicated region body
PF: predicated region fallthrough
CT: control target
= control target key end

     0   :  { %14 = vsyncpa [#allocation3], 0  ;;  %s994_s0 = inlined_call_operand.vmem [shape: f32[16,128], index: 0, kind: input, shape index: {}]   ;;  %s995_s1 = inlined_call_operand.hbm [shape: f32[128,128], index: 1, kind: input, shape index: {}]   ;;  %s996_s2 = inlined_call_operand.vmem [shape: f32[1,128], index: 2, kind: input, shape index: {}]   ;;  %s997_s3 = inlined_call_operand.vmem [shape: f32[1,128], index: 3, kind: input, shape index: {}]   ;;  %s998_s4 = inlined_call_operand.hbm [shape: f32[128,128], index: 4, kind: input, shape index: {}]   ;;  %s999_s5 = inlined_call_operand.vmem [shape: f32[1,128], index: 5, kind: input, shape index: {}]   ;;  %s1000_s6 = inlined_call_operand.vmem [shape: f32[1,128], index: 6, kind: input, shape index: {}]   ;;  %s1001_s7 = inlined_call_operand.hbm [shape: f32[128,128], index: 7, kind: input, shape index: {}]   ;;  %s1002_s8 = inlined_call_operand.vmem [shape: f32[1,128], index: 8, kind: input, shape index: {}]   ;;  %s1003_s9 = inlined_call_operand.hbm [shape: f32[16,128], index: 9, kind: output, shape index: {}]  }
   0x1   :  { %15 = vsyncpa [#allocation6], 0 }
   0x2   :  { %16 = vsyncpa [#allocation4], 0  ;;  %s844_s30 = smov [#allocation5]   ;;  %s845_s11 = smov [#allocation2]  }
   0x3   :  { %s40_s10 = sshll.u32 %s844_s30, 4  ;;  %s24_s12 = sshll.u32 %s845_s11, 4  ;;  %s41_s10 = int_to_ptr.vmem [resolvable:$true] %s40_s10  ;;  %s900_s12 = int_to_ptr.vmem [resolvable:$true] %s24_s12 }
   0x4   :  { %s750_s15 = scalar_lea.hbm %s998_s4, 2048 }
   0x5   :  { %p751_p0 = scmp.ne.s32.totalorder %s998_s4, %s750_s15  ;;  %p754_p1 = scmp.lt.u32.totalorder %s750_s15, %s998_s4 }
   0x7   :  { %p756_p2 = pnand %p754_p1, %p751_p0 }
   0x9   :  { %759 = shalt.err (!%p756_p2)
}
   0xa   :  { %s760_s20 = scalar_lea.vmem %s41_s10, 2048  ;;  %p765_p4 = scmp.lt.s32.totalorder %s41_s10, %s41_s10 }
   0xb   :  { %p761_p3 = scmp.ne.s32.totalorder %s41_s10, %s760_s20  ;;  %p766_p5 = scmp.lt.s32.totalorder %s760_s20, %s760_s20 }
   0xd   :  { %p767_p6 = por %p766_p5, %p765_p4 }
   0xf   :  { %p768_p7 = pnand %p767_p6, %p761_p3 }
  0x11   :  { %771 = shalt.err (!%p768_p7)
}
  0x12   :  { %s846_s21 = smov 128   ;;  %s847_s22 = smov 8  }
  0x13   :  { %46 = dma.hbm_to_vmem [thread:$0]  %s998_s4, 2048, %s41_s10, [#allocation6], %s846_s21, %s846_s21, %s847_s22  }
  0x14   :  { %s772_s27 = scalar_lea.hbm %s995_s1, 2048 }
  0x15   :  { %p773_p8 = scmp.ne.s32.totalorder %s995_s1, %s772_s27  ;;  %p776_p9 = scmp.lt.u32.totalorder %s772_s27, %s995_s1 }
  0x17   :  { %p778_p10 = pnand %p776_p9, %p773_p8 }
  0x19   :  { %781 = shalt.err (!%p778_p10)
}
  0x1a   :  { %s782_s13 = scalar_lea.vmem %s900_s12, 2048  ;;  %p787_p12 = scmp.lt.s32.totalorder %s900_s12, %s900_s12 }
  0x1b   :  { %p783_p11 = scmp.ne.s32.totalorder %s900_s12, %s782_s13  ;;  %p788_p13 = scmp.lt.s32.totalorder %s782_s13, %s782_s13 }
  0x1d   :  { %p789_p0 = por %p788_p13, %p787_p12 }
  0x1f   :  { %p790_p1 = pnand %p789_p0, %p783_p11 }
  0x21   :  { %793 = shalt.err (!%p790_p1)
}
  0x22   :  { %30 = dma.hbm_to_vmem [thread:$0]  %s995_s1, 2048, %s900_s12, [#allocation3], %s846_s21, %s846_s21, %s847_s22  }
  0x23   :  { %s848_s14 = smov [#allocation7]   ;;  %s794_s18 = scalar_lea.hbm %s1001_s7, 2048 }
  0x24   :  { %s56_s15 = sshll.u32 %s848_s14, 4  ;;  %p795_p2 = scmp.ne.s32.totalorder %s1001_s7, %s794_s18  ;;  %s57_s15 = int_to_ptr.vmem [resolvable:$true] %s56_s15 }
  0x25   :  { %p798_p3 = scmp.lt.u32.totalorder %s794_s18, %s1001_s7 }
  0x27   :  { %p800_p4 = pnand %p798_p3, %p795_p2 }
  0x29   :  { %803 = shalt.err (!%p800_p4)
}
  0x2a   :  { %s804_s25 = scalar_lea.vmem %s57_s15, 2048  ;;  %p809_p6 = scmp.lt.s32.totalorder %s57_s15, %s57_s15 }
  0x2b   :  { %p805_p5 = scmp.ne.s32.totalorder %s57_s15, %s804_s25  ;;  %p810_p7 = scmp.lt.s32.totalorder %s804_s25, %s804_s25 }
  0x2d   :  { %p811_p8 = por %p810_p7, %p809_p6 }
  0x2f   :  { %p812_p9 = pnand %p811_p8, %p805_p5 }
  0x31   :  { %815 = shalt.err (!%p812_p9)
}
  0x32   :  { %62 = dma.hbm_to_vmem [thread:$0]  %s1001_s7, 2048, %s57_s15, [#allocation6], %s846_s21, %s846_s21, %s847_s22  }
  0x33   :  { %838 = dma.done.wait [#allocation3], 2048  }
  0x34   :  { %839 = vsyncadd [#allocation3], 4294965248 }
  0x35   :  { %840 = dma.done.wait [#allocation6], 4096  }
  0x36   :  { %841 = vsyncadd [#allocation6], 4294963200  ;;  %v76_v0 = vld [vmem:[#allocation2] sm:$0xff]  ;;  %v77_v1 = vld [vmem:[#allocation2 + $0x8] sm:$0xff] }
  0x37   :  { %v78_v2 = vld [vmem:[#allocation2 + $0x10] sm:$0xff]  ;;  %v636_v3 = vpack.c.bf16 %v77_v1, %v76_v0  ;;  %v79_v4 = vld [vmem:[#allocation2 + $0x18] sm:$0xff]  ;;  %v80_v6 = vld [vmem:[#allocation2 + $0x20] sm:$0xff] }
  0x38   :  { %v640_v5 = vpack.c.bf16 %v79_v4, %v78_v2  ;;  %v81_v7 = vld [vmem:[#allocation2 + $0x28] sm:$0xff]  ;;  %v74_v9 = vld [vmem:[%s994_s0] sm:$0xff]  ;;  %v82_v10 = vld [vmem:[#allocation2 + $0x30] sm:$0xff] }
  0x39   :  { %637 = vmatprep.subr.bf16.mxu0 %v636_v3  ;;  %v644_v8 = vpack.c.bf16 %v81_v7, %v80_v6  ;;  %v83_v11 = vld [vmem:[#allocation2 + $0x38] sm:$0xff]  ;;  %563 = vmatprep.mubr.f32.mxu0 %v74_v9  ;;  %v84_v13 = vld [vmem:[#allocation2 + $0x40] sm:$0xff]  ;;  %v85_v14 = vld [vmem:[#allocation2 + $0x48] sm:$0xff]  ;;  %v194_v9 = vlaneseq }
  0x3a   :  { %639 = vmatpush3.bf16.msra.mxu0 %v636_v3  ;;  %v648_v12 = vpack.c.bf16 %v83_v11, %v82_v10  ;;  %v652_v15 = vpack.c.bf16 %v85_v14, %v84_v13  ;;  %v86_v16 = vld [vmem:[#allocation2 + $0x50] sm:$0xff]  ;;  %v87_v17 = vld [vmem:[#allocation2 + $0x58] sm:$0xff]  ;;  %v88_v19 = vld [vmem:[#allocation2 + $0x60] sm:$0xff] }
  0x3b   :  { %641 = vmatprep.subr.bf16.mxu0 %v640_v5  ;;  %v656_v18 = vpack.c.bf16 %v87_v17, %v86_v16  ;;  %v89_v20 = vld [vmem:[#allocation2 + $0x68] sm:$0xff]  ;;  %v90_v22 = vld [vmem:[#allocation2 + $0x70] sm:$0xff]  ;;  %v91_v23 = vld [vmem:[#allocation2 + $0x78] sm:$0xff]  ;;  %v195_v10 = vshrl.u32 %v194_v9, 7 }
  0x3c   :  { %v660_v21 = vpack.c.bf16 %v89_v20, %v88_v19  ;;  %v664_v24 = vpack.c.bf16 %v91_v23, %v90_v22  ;;  %v75_v25 = vld [vmem:[%s994_s0 + $0x8] sm:$0xff]  ;;  %v210_v26 = vld [vmem:[#allocation5] sm:$0xff]  ;;  %v212_v29 = vld [vmem:[#allocation5 + $0x10] sm:$0xff] }
  0x3d   :  { %v211_v27 = vld [vmem:[#allocation5 + $0x8] sm:$0xff]  ;;  %v213_v30 = vld [vmem:[#allocation5 + $0x18] sm:$0xff]  ;;  %v214_v32 = vld [vmem:[#allocation5 + $0x20] sm:$0xff] }
  0x3e   :  { %643 = vmatpush3.bf16.msra.mxu0 %v640_v5  ;;  %v668_v28 = vpack.c.bf16 %v211_v27, %v210_v26  ;;  %v672_v31 = vpack.c.bf16 %v213_v30, %v212_v29  ;;  %v215_v33 = vld [vmem:[#allocation5 + $0x28] sm:$0xff]  ;;  %v216_v35 = vld [vmem:[#allocation5 + $0x30] sm:$0xff]  ;;  %v217_v36 = vld [vmem:[#allocation5 + $0x38] sm:$0xff] }
  0x3f   :  { %645 = vmatprep.subr.bf16.mxu0 %v644_v8  ;;  %v676_v34 = vpack.c.bf16 %v215_v33, %v214_v32  ;;  %v680_v37 = vpack.c.bf16 %v217_v36, %v216_v35  ;;  %v218_v38 = vld [vmem:[#allocation5 + $0x40] sm:$0xff]  ;;  %v219_v39 = vld [vmem:[#allocation5 + $0x48] sm:$0xff]  ;;  %v220_v41 = vld [vmem:[#allocation5 + $0x50] sm:$0xff] }
  0x40   :  { %669 = vmatprep.subr.bf16.mxu1 %v668_v28  ;;  %v684_v40 = vpack.c.bf16 %v219_v39, %v218_v38  ;;  %v221_v42 = vld [vmem:[#allocation5 + $0x58] sm:$0xff]  ;;  %v222_v44 = vld [vmem:[#allocation5 + $0x60] sm:$0xff]  ;;  %v223_v45 = vld [vmem:[#allocation5 + $0x68] sm:$0xff] }
  0x41   :  { %671 = vmatpush3.bf16.msra.mxu1 %v668_v28  ;;  %v688_v43 = vpack.c.bf16 %v221_v42, %v220_v41  ;;  %v692_v46 = vpack.c.bf16 %v223_v45, %v222_v44  ;;  %v224_v47 = vld [vmem:[#allocation5 + $0x70] sm:$0xff]  ;;  %v225_v48 = vld [vmem:[#allocation5 + $0x78] sm:$0xff]  ;;  %v189_v11 = vld [vmem:[%s996_s2] sm:$0x1] }
  0x42   :  { %647 = vmatpush3.bf16.msra.mxu0 %v644_v8  ;;  %673 = vmatprep.subr.bf16.mxu1 %v672_v31  ;;  %v696_v49 = vpack.c.bf16 %v225_v48, %v224_v47  ;;  %v344_v26 = vld [vmem:[#allocation7] sm:$0xff]  ;;  %v345_v27 = vld [vmem:[#allocation7 + $0x8] sm:$0xff]  ;;  %v346_v29 = vld [vmem:[#allocation7 + $0x10] sm:$0xff] }
  0x43   :  { %649 = vmatprep.subr.bf16.mxu0 %v648_v12  ;;  %v700_v28 = vpack.c.bf16 %v345_v27, %v344_v26  ;;  %v347_v30 = vld [vmem:[#allocation7 + $0x18] sm:$0xff]  ;;  %v348_v32 = vld [vmem:[#allocation7 + $0x20] sm:$0xff]  ;;  %v349_v33 = vld [vmem:[#allocation7 + $0x28] sm:$0xff] }
  0x44   :  { %v350_v35 = vld [vmem:[#allocation7 + $0x30] sm:$0xff]  ;;  %v351_v36 = vld [vmem:[#allocation7 + $0x38] sm:$0xff]  ;;  %v352_v38 = vld [vmem:[#allocation7 + $0x40] sm:$0xff] }
  0x45   :  { %675 = vmatpush3.bf16.msra.mxu1 %v672_v31  ;;  %v704_v31 = vpack.c.bf16 %v347_v30, %v346_v29  ;;  %v353_v39 = vld [vmem:[#allocation7 + $0x48] sm:$0xff]  ;;  %v354_v41 = vld [vmem:[#allocation7 + $0x50] sm:$0xff]  ;;  %v355_v42 = vld [vmem:[#allocation7 + $0x58] sm:$0xff] }
  0x46   :  { %651 = vmatpush3.bf16.msra.mxu0 %v648_v12  ;;  %677 = vmatprep.subr.bf16.mxu1 %v676_v34  ;;  %v961_v12 = vsub.s32 0, %v195_v10  ;;  %v356_v44 = vld [vmem:[#allocation7 + $0x60] sm:$0xff]  ;;  %v357_v45 = vld [vmem:[#allocation7 + $0x68] sm:$0xff]  ;;  %v358_v47 = vld [vmem:[#allocation7 + $0x70] sm:$0xff] }
  0x47   :  { %653 = vmatprep.subr.bf16.mxu0 %v652_v15  ;;  %v359_v48 = vld [vmem:[#allocation7 + $0x78] sm:$0xff]  ;;  %v323_v9 = vld [vmem:[%s999_s5] sm:$0x1] }
  0x49   :  { %679 = vmatpush3.bf16.msra.mxu1 %v676_v34  ;;  %v708_v34 = vpack.c.bf16 %v349_v33, %v348_v32 }
  0x4a   :  { %655 = vmatpush3.bf16.msra.mxu0 %v652_v15  ;;  %681 = vmatprep.subr.bf16.mxu1 %v680_v37  ;;  %v191_v15 = vld [vmem:[%s997_s3] sm:$0x1] }
  0x4b   :  { %657 = vmatprep.subr.bf16.mxu0 %v656_v18 }
  0x4d   :  { %683 = vmatpush3.bf16.msra.mxu1 %v680_v37  ;;  %v712_v37 = vpack.c.bf16 %v351_v36, %v350_v35 }
  0x4e   :  { %659 = vmatpush3.bf16.msra.mxu0 %v656_v18  ;;  %685 = vmatprep.subr.bf16.mxu1 %v684_v40 }
  0x4f   :  { %661 = vmatprep.subr.bf16.mxu0 %v660_v21 }
  0x51   :  { %687 = vmatpush3.bf16.msra.mxu1 %v684_v40  ;;  %v716_v40 = vpack.c.bf16 %v353_v39, %v352_v38 }
  0x52   :  { %663 = vmatpush3.bf16.msra.mxu0 %v660_v21  ;;  %689 = vmatprep.subr.bf16.mxu1 %v688_v43 }
  0x53   :  { %665 = vmatprep.subr.bf16.mxu0 %v664_v24 }
  0x55   :  { %691 = vmatpush3.bf16.msra.mxu1 %v688_v43  ;;  %v720_v43 = vpack.c.bf16 %v355_v42, %v354_v41 }
  0x56   :  { %667 = vmatpush3.bf16.msra.mxu0 %v664_v24  ;;  %693 = vmatprep.subr.bf16.mxu1 %v692_v46 }
  0x57   :  { %701 = vmatprep.subr.bf16.mxu0 %v700_v28 }
  0x59   :  { %564 = vmatmul.mubr.f32.vlgmr.msra.gmra.mrb[0].mxu0 %v75_v25  ;;  %695 = vmatpush3.bf16.msra.mxu1 %v692_v46  ;;  %v724_v46 = vpack.c.bf16 %v357_v45, %v356_v44 }
  0x5a   :  { %697 = vmatprep.subr.bf16.mxu1 %v696_v49  ;;  %703 = vmatpush3.bf16.msra.mxu0 %v700_v28 }
  0x5b   :  { %705 = vmatprep.subr.bf16.mxu0 %v704_v31 }
  0x5d   :  { %699 = vmatpush3.bf16.msra.mxu1 %v696_v49  ;;  %v728_v49 = vpack.c.bf16 %v359_v48, %v358_v47 }
  0x5e   :  { %707 = vmatpush3.bf16.msra.mxu0 %v704_v31 }
  0x5f   :  { %709 = vmatprep.subr.bf16.mxu0 %v708_v34 }
  0x62   :  { %711 = vmatpush3.bf16.msra.mxu0 %v708_v34 }
  0x63   :  { %713 = vmatprep.subr.bf16.mxu0 %v712_v37 }
  0x66   :  { %715 = vmatpush3.bf16.msra.mxu0 %v712_v37 }
  0x67   :  { %717 = vmatprep.subr.bf16.mxu0 %v716_v40 }
  0x6a   :  { %719 = vmatpush3.bf16.msra.mxu0 %v716_v40 }
  0x6b   :  { %721 = vmatprep.subr.bf16.mxu0 %v720_v43 }
  0x6e   :  { %723 = vmatpush3.bf16.msra.mxu0 %v720_v43 }
  0x6f   :  { %725 = vmatprep.subr.bf16.mxu0 %v724_v46 }
  0x72   :  { %727 = vmatpush3.bf16.msra.mxu0 %v724_v46 }
  0x73   :  { %729 = vmatprep.subr.bf16.mxu0 %v728_v49 }
  0x76   :  { %731 = vmatpush3.bf16.msra.mxu0 %v728_v49 }
 0x12c   :  { %v565_v50 = vpop.f32.mrb[0].mxu0 }
 0x12d   :  { %v175_v51 = vmul.f32 %v565_v50, %v565_v50  ;;  %v158_v52 = vpop.f32.mrb[1].mxu0 }
 0x12e   :  { %v167_v53 = vadd.f32 %v565_v50, %v158_v52  ;;  %v174_v54 = vmul.f32 %v158_v52, %v158_v52 }
 0x130   :  { %v168_v55 = vrot.slane %v167_v53, 4  ;;  %v176_v56 = vadd.f32 %v175_v51, %v174_v54 }
 0x132   :  { %v169_v57 = vadd.f32 %v168_v55, %v167_v53  ;;  %v177_v58 = vrot.slane %v176_v56, 4 }
 0x134   :  { %v170_v59 = vrot.slane %v169_v57, 2  ;;  %v178_v60 = vadd.f32 %v177_v58, %v176_v56 }
 0x136   :  { %v171_v61 = vadd.f32 %v170_v59, %v169_v57  ;;  %v179_v62 = vrot.slane %v178_v60, 2 }
 0x138   :  { %v172_v63 = vrot.slane %v171_v61, 1  ;;  %v180_v0 = vadd.f32 %v179_v62, %v178_v60 }
 0x13a   :  { %v181_v1 = vrot.slane %v180_v0, 1  ;;  %v173_v2 = vadd.f32 %v172_v63, %v171_v61 }
 0x13c   :  { %v182_v3 = vadd.f32 %v181_v1, %v180_v0  ;;  %v183_v4 = vmul.f32 0.0625, %v173_v2 }
 0x13e   :  { %v184_v5 = vmul.f32 0.0625, %v182_v3  ;;  %v185_v6 = vmul.f32 %v183_v4, %v183_v4 }
 0x140   :  { %v186_v7 = vsub.f32 %v184_v5, %v185_v6 }
 0x142   :  { %v187_v8 = vadd.f32 1e-05, %v186_v7 }
 0x144   :  { %738 = vrsqrt.f32 %v187_v8 }
 0x14e   :  { %v739_v13 = vpop.eup %738 }
 0x14f   :  { %v190_v14 = vmul.f32 %v739_v13, %v189_v11  ;;  %v325_v13 = vld [vmem:[%s1000_s6] sm:$0x1]  ;;  %s849_s6 = smov [#allocation8]  }
 0x150   :  { %s461_s14 = sshll.u32 %s849_s6, 4  ;;  %s462_s14 = int_to_ptr.vmem [resolvable:$true] %s461_s14 }
 0x151   :  { %v192_v16 = vmul.f32 %v190_v14, %v183_v4  ;;  %v197_v17 = vrot.slane %v190_v14, %v961_v12  ;;  %p821_p11 = scmp.lt.s32.totalorder %s462_s14, %s462_s14 }
 0x153   :  { %v193_v18 = vsub.f32 %v191_v15, %v192_v16  ;;  %v198_v19 = vmul.f32 %v197_v17, %v158_v52  ;;  %v199_v20 = vmul.f32 %v565_v50, %v197_v17 }
 0x155   :  { %v204_v21 = vrot.slane %v193_v18, %v961_v12 }
 0x157   :  { %v206_v22 = vadd.f32 %v204_v21, %v198_v19  ;;  %v207_v23 = vadd.f32 %v204_v21, %v199_v20 }
 0x159   :  { %v208_v24 = vmax.f32 %v206_v22, 0.0  ;;  %v209_v25 = vmax.f32 %v207_v23, 0.0 }
 0x15b   :  { %598 = vmatprep.mubr.f32.mxu1 %v208_v24  ;;  %v474_v24 = vld [vmem:[%s1002_s8] ss:$0 sm:$0xff]  ;;  %s816_s8 = scalar_lea.vmem %s462_s14, 256 }
 0x15c   :  { %599 = vmatmul.mubr.f32.vlgmr.msra.gmra.mrb[0].mxu1 %v209_v25  ;;  %p817_p10 = scmp.ne.s32.totalorder %s462_s14, %s816_s8  ;;  %p822_p12 = scmp.lt.s32.totalorder %s816_s8, %s816_s8 }
 0x15e   :  { %p823_p13 = por %p822_p12, %p821_p11 }
 0x160   :  { %p824_p0 = pnand %p823_p13, %p817_p10 }
 0x22f   :  { %v600_v50 = vpop.f32.mrb[0].mxu1 }
 0x230   :  { %v309_v51 = vmul.f32 %v600_v50, %v600_v50  ;;  %v292_v52 = vpop.f32.mrb[1].mxu1 }
 0x231   :  { %v301_v53 = vadd.f32 %v600_v50, %v292_v52  ;;  %v308_v54 = vmul.f32 %v292_v52, %v292_v52 }
 0x233   :  { %v302_v55 = vrot.slane %v301_v53, 4  ;;  %v310_v56 = vadd.f32 %v309_v51, %v308_v54 }
 0x235   :  { %v303_v57 = vadd.f32 %v302_v55, %v301_v53  ;;  %v311_v58 = vrot.slane %v310_v56, 4 }
 0x237   :  { %v304_v59 = vrot.slane %v303_v57, 2  ;;  %v312_v60 = vadd.f32 %v311_v58, %v310_v56 }
 0x239   :  { %v305_v61 = vadd.f32 %v304_v59, %v303_v57  ;;  %v313_v62 = vrot.slane %v312_v60, 2 }
 0x23b   :  { %v306_v63 = vrot.slane %v305_v61, 1  ;;  %v314_v0 = vadd.f32 %v313_v62, %v312_v60 }
 0x23d   :  { %v307_v1 = vadd.f32 %v306_v63, %v305_v61  ;;  %v315_v2 = vrot.slane %v314_v0, 1 }
 0x23f   :  { %v316_v3 = vadd.f32 %v315_v2, %v314_v0  ;;  %v317_v4 = vmul.f32 0.0625, %v307_v1 }
 0x241   :  { %v318_v5 = vmul.f32 0.0625, %v316_v3  ;;  %v319_v6 = vmul.f32 %v317_v4, %v317_v4 }
 0x243   :  { %v320_v7 = vsub.f32 %v318_v5, %v319_v6 }
 0x245   :  { %v321_v8 = vadd.f32 1e-05, %v320_v7 }
 0x247   :  { %740 = vrsqrt.f32 %v321_v8 }
 0x251   :  { %v741_v10 = vpop.eup %740 }
 0x252   :  { %v324_v11 = vmul.f32 %v741_v10, %v323_v9 }
 0x254   :  { %v326_v14 = vmul.f32 %v324_v11, %v317_v4  ;;  %v331_v15 = vrot.slane %v324_v11, %v961_v12 }
 0x256   :  { %v327_v16 = vsub.f32 %v325_v13, %v326_v14  ;;  %v332_v17 = vmul.f32 %v331_v15, %v292_v52  ;;  %v333_v18 = vmul.f32 %v600_v50, %v331_v15 }
 0x258   :  { %v338_v19 = vrot.slane %v327_v16, %v961_v12 }
 0x25a   :  { %v340_v20 = vadd.f32 %v338_v19, %v332_v17  ;;  %v341_v21 = vadd.f32 %v338_v19, %v333_v18 }
 0x25c   :  { %v342_v22 = vmax.f32 %v340_v20, 0.0  ;;  %v343_v23 = vmax.f32 %v341_v21, 0.0 }
 0x25e   :  { %633 = vmatprep.mubr.f32.mxu0 %v342_v22 }
 0x25f   :  { %634 = vmatmul.mubr.f32.vlgmr.msra.gmra.mrb[2].mxu0 %v343_v23 }
 0x332   :  { %v635_v25 = vpop.f32.mrb[2].mxu0 }
 0x333   :  { %v439_v26 = vadd.f32 %v635_v25, %v474_v24  ;;  %v433_v27 = vpop.f32.mrb[3].mxu0 }
 0x334   :  { %v434_v28 = vadd.f32 %v474_v24, %v433_v27 }
 0x335   :  { %v476_v29 = vmul.f32 -1.442695, %v439_v26 }
 0x336   :  { %v475_v30 = vmul.f32 -1.442695, %v434_v28 }
 0x337   :  { %742 = vpow2.f32 %v476_v29 }
 0x338   :  { %744 = vpow2.f32 %v475_v30 }
 0x341   :  { %v743_v31 = vpop.eup %742 }
 0x342   :  { %v745_v12 = vpop.eup %744  ;;  %v449_v32 = vadd.f32 1.0, %v743_v31 }
 0x343   :  { %v448_v33 = vadd.f32 1.0, %v745_v12 }
 0x344   :  { %746 = vrcp.f32 %v449_v32 }
 0x345   :  { %748 = vrcp.f32 %v448_v33 }
 0x34e   :  { %v747_v34 = vpop.eup %746 }
 0x34f   :  { %v749_v35 = vpop.eup %748  ;;  %455 = vst [vmem:[#allocation8 + $0x8] sm:$0xff] %v747_v34 }
 0x350   :  { %454 = vst [vmem:[#allocation8] sm:$0xff] %v749_v35 }
 0x351   :  { %827 = shalt.err (!%p824_p0)
}
 0x352   :  { %s828_s17 = scalar_lea.hbm %s1003_s9, 256 }
 0x353   :  { %p829_p1 = scmp.ne.s32.totalorder %s1003_s9, %s828_s17  ;;  %p832_p2 = scmp.lt.u32.totalorder %s828_s17, %s1003_s9 }
 0x355   :  { %p834_p3 = pnand %p832_p2, %p829_p1 }
 0x357   :  { %837 = shalt.err (!%p834_p3)
}
 0x358   :  { %467 = dma.vmem_to_hbm [thread:$0]  %s462_s14, 256, %s1003_s9, [#allocation4], %s846_s21, %s846_s21, %s847_s22  }
 0x359   :  { %842 = dma.done.wait [#allocation4], 256  }
 0x35a   :  { %843 = vsyncadd [#allocation4], 4294967040 }
 0x35b   :  { %471 = vsyncpa [#allocation3], 1 }
 0x35c   :  { %472 = vsyncpa [#allocation6], 1 }
 0x35d   :  { %473 = vsyncpa [#allocation4], 1 }

</bundles_post_ra>
